<compile_context>
chip_gen: v6e
topology: v6e:2x2x1
jax: 0.10.0
libtpu: 0.0.40
codegen_flags: <defaults>
</compile_context>

<pallas_src>
import math
import jax
import jax.numpy as jnp
from jax.experimental import pallas as pl
from jax.experimental.pallas import tpu as pltpu

# Hyperparameters (stand-ins for args.network1_layer1 / layer2 / init_w)
NETWORK1_LAYER1 = 64
NETWORK1_LAYER2 = 32
INIT_W = 3e-3

LANE = 128            # TPU lane width; hidden/output feature dims padded to this.
MAX_BATCH_TILE = 1024 # per-step overhead amortized; ~1 MiB double-buffered out tile.


def _round_up(n, m):
    return ((n + m - 1) // m) * m


def _cdiv(a, b):
    return -(-a // b)


def _pad_to(arr, shape):
    pads = [(0, t - s) for s, t in zip(arr.shape, shape)]
    assert all(p[1] >= 0 for p in pads), "feature dims must be <= 128"
    return jnp.pad(arr, pads)


def mlp_kernel(x_ref, w1_ref, w23_ref, b_ref, o_ref):
    """relu(x@W1+b1) -> relu(.@W2+b2) -> .@W3+b3.

    x_ref:   [TB, S]        (native state_dim last dim, f32)
    w1_ref:  [S, 128]       (weight dtype: f32 or bf16)
    w23_ref: [2, 128, 128]  (weight dtype)
    b_ref:   [3, 128]       (f32)
    o_ref:   [TB, 128]      (f32, lane-dense -> unmasked vst)
    """
    wdt = w1_ref.dtype
    x = x_ref[...]
    bias = b_ref[...]                      # single load, sliced in-register
    b1 = bias[0:1, :]
    b2 = bias[1:2, :]
    b3 = bias[2:3, :]

    h = jnp.dot(x.astype(wdt), w1_ref[...],
                preferred_element_type=jnp.float32) + b1
    h = jnp.maximum(h, 0.0)
    h = jnp.dot(h.astype(wdt), w23_ref[0],
                preferred_element_type=jnp.float32) + b2
    h = jnp.maximum(h, 0.0)
    out = jnp.dot(h.astype(wdt), w23_ref[1],
                  preferred_element_type=jnp.float32) + b3
    o_ref[...] = out.astype(o_ref.dtype)


def prepare_params(params, dtype=jnp.bfloat16):
    """One-time packing: pad output dims to 128 lanes, stack W2/W3 and biases.

    Called ONCE at init (hoisted out of the forward path).  `dtype` controls
    the matmul-operand dtype (bf16 default: MXU-native on v5e/v6e/v7x, f32
    accumulation preserved).  Biases stay f32.
    """
    S = params["w1"].shape[0]
    w1 = _pad_to(params["w1"].astype(dtype), (S, LANE))                 # [S, 128]
    w23 = jnp.stack([_pad_to(params["w2"].astype(dtype), (LANE, LANE)),
                     _pad_to(params["w3"].astype(dtype), (LANE, LANE))])  # [2,128,128]
    b = jnp.stack([_pad_to(params["b1"][0].astype(jnp.float32), (LANE,)),
                   _pad_to(params["b2"][0].astype(jnp.float32), (LANE,)),
                   _pad_to(params["b3"][0].astype(jnp.float32), (LANE,))])  # [3,128]
    return dict(w1=w1, w23=w23, b=b,
                state_dim=S, action_dim=params["w3"].shape[1])


def _pick_batch_tile(B):
    # Minimize last-block padding; force >=2 grid steps past tiny batches so
    # both v7x TensorCores get work on the "parallel" axis.
    n_tiles = max(_cdiv(B, MAX_BATCH_TILE), 2 if B > 64 else 1)
    return _round_up(_cdiv(B, n_tiles), 8)


def net_forward_padded(x, packed, *, batch_tile=None):
    """Runs the kernel; returns the padded [b_pad, 128] f32 output slab.

    Prefer this when the consumer can take the padded slab (avoids an extra
    HBM round trip for the slice).
    """
    B, S = x.shape
    assert S == packed["state_dim"], "x last dim must equal state_dim"

    if batch_tile is None:
        batch_tile = _pick_batch_tile(B)
    else:
        assert batch_tile % 8 == 0, "batch_tile must be a multiple of 8 (sublane)"

    b_pad = _round_up(B, batch_tile)
    x_p = x.astype(jnp.float32)
    if b_pad != B:
        x_p = jnp.pad(x_p, ((0, b_pad - B), (0, 0)))   # batch rows only, native width

    return pl.pallas_call(
        mlp_kernel,
        out_shape=jax.ShapeDtypeStruct((b_pad, LANE), jnp.float32),
        grid=(b_pad // batch_tile,),
        in_specs=[
            # x: tiled over batch, NATIVE last dim (== full array dim -> legal).
            pl.BlockSpec((batch_tile, S), lambda i: (i, 0)),
            # layer-1 weight, VMEM-resident across all grid steps.
            pl.BlockSpec((S, LANE), lambda i: (0, 0)),
            # packed layer-2/3 weights, resident.
            pl.BlockSpec((2, LANE, LANE), lambda i: (0, 0, 0)),
            # packed biases (f32), resident.
            pl.BlockSpec((3, LANE), lambda i: (0, 0)),
        ],
        out_specs=pl.BlockSpec((batch_tile, LANE), lambda i: (i, 0)),
        compiler_params=pltpu.CompilerParams(
            dimension_semantics=("parallel",)),        # megacore split on v7x
    )(x_p, packed["w1"], packed["w23"], packed["b"])


def net_forward(x, packed, *, batch_tile=None):
    """Convenience wrapper matching Net.forward semantics: returns [B, action_dim]."""
    out = net_forward_padded(x, packed, batch_tile=batch_tile)
    return out[:x.shape[0], :packed["action_dim"]]


def fanin_init_jax(key, size, fanin=None):
    """Mirror of fanin_init: uniform(-1/sqrt(fanin), 1/sqrt(fanin)), fanin=size[0]."""
    fanin = fanin or size[0]
    v = 1.0 / math.sqrt(fanin)
    return jax.random.uniform(key, size, minval=-v, maxval=v, dtype=jnp.float32)


def init_params(key, state_dim, action_dim):
    """Parameter init matching the PyTorch module's shapes/init.

    PyTorch Linear weight is [out, in]; fanin_init is applied on that shape
    (fanin = out, replicating the original code).  Transposed to [in, out] for
    the kernel (x @ W + b).  Biases use PyTorch's default Linear bias range
    (+-1/sqrt(in_features)); the final layer's *weight* uses +-init_w, matching
    the reference which only overrides final.weight.
    """
    k = jax.random.split(key, 6)
    h1, h2 = NETWORK1_LAYER1, NETWORK1_LAYER2

    w1 = fanin_init_jax(k[0], (h1, state_dim)).T          # [s, h1]
    b1 = jax.random.uniform(k[1], (1, h1),
                            minval=-1.0 / math.sqrt(state_dim),
                            maxval=1.0 / math.sqrt(state_dim),
                            dtype=jnp.float32)

    w2 = fanin_init_jax(k[2], (h2, h1)).T                 # [h1, h2]
    b2 = jax.random.uniform(k[3], (1, h2),
                            minval=-1.0 / math.sqrt(h1),
                            maxval=1.0 / math.sqrt(h1),
                            dtype=jnp.float32)

    w3 = jax.random.uniform(k[4], (action_dim, h2),
                            minval=-INIT_W, maxval=INIT_W,
                            dtype=jnp.float32).T          # [h2, a]
    b3 = jax.random.uniform(k[5], (1, action_dim),
                            minval=-1.0 / math.sqrt(h2),
                            maxval=1.0 / math.sqrt(h2),
                            dtype=jnp.float32)

    return dict(w1=w1, b1=b1, w2=w2, b2=b2, w3=w3, b3=b3)


def net_forward_ref(x, p):
    """Pure-JAX reference for validation."""
    h1 = jnp.maximum(x @ p["w1"] + p["b1"], 0.0)
    h2 = jnp.maximum(h1 @ p["w2"] + p["b2"], 0.0)
    return h2 @ p["w3"] + p["b3"]


if __name__ == "__main__":
    key = jax.random.PRNGKey(0)
    state_dim, action_dim, batch = 16, 4, 8

    k_params, k_x = jax.random.split(key)
    params = init_params(k_params, state_dim, action_dim)
    x = jax.random.normal(k_x, (batch, state_dim), dtype=jnp.float32)
    ref = net_forward_ref(x, params)

    # --- f32-operand path: bit-faithful to the PyTorch forward -------------
    packed_f32 = prepare_params(params, dtype=jnp.float32)   # packed once, at init
    out = jax.block_until_ready(net_forward(x, packed_f32))
    assert out.shape == (batch, action_dim)
    assert jnp.allclose(out, ref, atol=1e-5, rtol=1e-5), "mismatch vs reference (f32)"

    # --- bf16-operand path (default, MXU-native); f32 accumulate -----------
    packed_bf16 = prepare_params(params)                     # dtype=bf16
    out_bf = jax.block_until_ready(net_forward(x, packed_bf16))
    assert out_bf.shape == (batch, action_dim)
    assert jnp.allclose(out_bf, ref, atol=3e-2, rtol=3e-2), "mismatch vs reference (bf16)"

    # --- non-trivial batch: >=2-step grid + padded last block --------------
    x_big = jax.random.normal(jax.random.PRNGKey(1), (1000, state_dim),
                              dtype=jnp.float32)
    ref_big = net_forward_ref(x_big, params)
    out_big = jax.block_until_ready(net_forward(x_big, packed_f32))
    assert out_big.shape == (1000, action_dim)
    assert jnp.allclose(out_big, ref_big, atol=1e-5, rtol=1e-5), "mismatch (batched)"

    print("KERNEL_OK")
</pallas_src>

<mosaic_0001>
module attributes {stable_mosaic.version = 11 : i64} {
  func.func @mlp_kernel(%arg0: i32, %arg1: memref<8x16xf32, #tpu.memory_space<vmem>>, %arg2: memref<16x128xf32, #tpu.memory_space<vmem>>, %arg3: memref<2x128x128xf32, #tpu.memory_space<vmem>>, %arg4: memref<3x128xf32, #tpu.memory_space<vmem>>, %arg5: memref<8x128xf32, #tpu.memory_space<vmem>>) attributes {dimension_semantics = [#tpu.dimension_semantics<parallel>], iteration_bounds = array<i64: 1>, scalar_prefetch = 0 : i64, scratch_operands = 0 : i64, tpu.core_type = #tpu.core_type<tc>, window_params = [{transform_indices = @transform_0, window_bounds = array<i64: 8, 16>}, {pipeline_mode = #tpu.pipeline_mode<synchronous>, transform_indices = @transform_1, window_bounds = array<i64: 16, 128>}, {pipeline_mode = #tpu.pipeline_mode<synchronous>, transform_indices = @transform_2, window_bounds = array<i64: 2, 128, 128>}, {pipeline_mode = #tpu.pipeline_mode<synchronous>, transform_indices = @transform_3, window_bounds = array<i64: 3, 128>}, {transform_indices = @transform_4, window_bounds = array<i64: 8, 128>}]} {
    %c0 = arith.constant 0 : index
    %c0_0 = arith.constant 0 : index
    %0 = vector.load %arg1[%c0, %c0_0] : memref<8x16xf32, #tpu.memory_space<vmem>>, vector<8x16xf32>
    %c0_1 = arith.constant 0 : index
    %c0_2 = arith.constant 0 : index
    %1 = vector.load %arg4[%c0_1, %c0_2] : memref<3x128xf32, #tpu.memory_space<vmem>>, vector<3x128xf32>
    %2 = vector.extract_strided_slice %1 {offsets = [0, 0], sizes = [1, 128], strides = [1, 1]} : vector<3x128xf32> to vector<1x128xf32>
    %3 = vector.extract_strided_slice %1 {offsets = [1, 0], sizes = [1, 128], strides = [1, 1]} : vector<3x128xf32> to vector<1x128xf32>
    %4 = vector.extract_strided_slice %1 {offsets = [2, 0], sizes = [1, 128], strides = [1, 1]} : vector<3x128xf32> to vector<1x128xf32>
    %c0_3 = arith.constant 0 : index
    %c0_4 = arith.constant 0 : index
    %5 = vector.load %arg2[%c0_3, %c0_4] : memref<16x128xf32, #tpu.memory_space<vmem>>, vector<16x128xf32>
    %cst = arith.constant dense<0.000000e+00> : vector<8x128xf32>
    %6 = tpu.matmul %0, %5, %cst {dimension_numbers = #tpu.dot_dimension_numbers<[1], [0], [0], [1], [0, 0, 1, 1], [], []>} : vector<8x16xf32>, vector<16x128xf32>, vector<8x128xf32> -> vector<8x128xf32>
    %7 = vector.broadcast %2 : vector<1x128xf32> to vector<8x128xf32>
    %8 = arith.addf %6, %7 : vector<8x128xf32>
    %cst_5 = arith.constant 0.000000e+00 : f32
    %9 = vector.broadcast %cst_5 : f32 to vector<8x128xf32>
    %10 = arith.maximumf %8, %9 : vector<8x128xf32>
    %c0_6 = arith.constant 0 : index
    %c0_7 = arith.constant 0 : index
    %c0_8 = arith.constant 0 : index
    %11 = vector.load %arg3[%c0_6, %c0_7, %c0_8] : memref<2x128x128xf32, #tpu.memory_space<vmem>>, vector<1x128x128xf32>
    %12 = vector.shape_cast %11 : vector<1x128x128xf32> to vector<128x128xf32>
    %cst_9 = arith.constant dense<0.000000e+00> : vector<8x128xf32>
    %13 = tpu.matmul %10, %12, %cst_9 {dimension_numbers = #tpu.dot_dimension_numbers<[1], [0], [0], [1], [0, 0, 1, 1], [], []>} : vector<8x128xf32>, vector<128x128xf32>, vector<8x128xf32> -> vector<8x128xf32>
    %14 = vector.broadcast %3 : vector<1x128xf32> to vector<8x128xf32>
    %15 = arith.addf %13, %14 : vector<8x128xf32>
    %cst_10 = arith.constant 0.000000e+00 : f32
    %16 = vector.broadcast %cst_10 : f32 to vector<8x128xf32>
    %17 = arith.maximumf %15, %16 : vector<8x128xf32>
    %c1 = arith.constant 1 : index
    %c0_11 = arith.constant 0 : index
    %c0_12 = arith.constant 0 : index
    %18 = vector.load %arg3[%c1, %c0_11, %c0_12] : memref<2x128x128xf32, #tpu.memory_space<vmem>>, vector<1x128x128xf32>
    %19 = vector.shape_cast %18 : vector<1x128x128xf32> to vector<128x128xf32>
    %cst_13 = arith.constant dense<0.000000e+00> : vector<8x128xf32>
    %20 = tpu.matmul %17, %19, %cst_13 {dimension_numbers = #tpu.dot_dimension_numbers<[1], [0], [0], [1], [0, 0, 1, 1], [], []>} : vector<8x128xf32>, vector<128x128xf32>, vector<8x128xf32> -> vector<8x128xf32>
    %21 = vector.broadcast %4 : vector<1x128xf32> to vector<8x128xf32>
    %22 = arith.addf %20, %21 : vector<8x128xf32>
    %c0_14 = arith.constant 0 : index
    %c0_15 = arith.constant 0 : index
    %23 = vector.load %arg5[%c0_14, %c0_15] : memref<8x128xf32, #tpu.memory_space<vmem>>, vector<8x128xf32>
    tpu.vector_store %arg5[%c0_14, %c0_15], %22 {strides = array<i32>} : memref<8x128xf32, #tpu.memory_space<vmem>>, vector<8x128xf32>,
    return
  }
  func.func @transform_0(%arg0: i32) -> (i32, i32) {
    %c0_i32 = arith.constant 0 : i32
    %c0_i32_0 = arith.constant 0 : i32
    return %arg0, %c0_i32 : i32, i32
  }
  func.func @transform_1(%arg0: i32) -> (i32, i32) {
    %c0_i32 = arith.constant 0 : i32
    %c0_i32_0 = arith.constant 0 : i32
    %c0_i32_1 = arith.constant 0 : i32
    return %c0_i32, %c0_i32_0 : i32, i32
  }
  func.func @transform_2(%arg0: i32) -> (i32, i32, i32) {
    %c0_i32 = arith.constant 0 : i32
    %c0_i32_0 = arith.constant 0 : i32
    %c0_i32_1 = arith.constant 0 : i32
    %c0_i32_2 = arith.constant 0 : i32
    return %c0_i32, %c0_i32_0, %c0_i32_1 : i32, i32, i32
  }
  func.func @transform_3(%arg0: i32) -> (i32, i32) {
    %c0_i32 = arith.constant 0 : i32
    %c0_i32_0 = arith.constant 0 : i32
    %c0_i32_1 = arith.constant 0 : i32
    return %c0_i32, %c0_i32_0 : i32, i32
  }
  func.func @transform_4(%arg0: i32) -> (i32, i32) {
    %c0_i32 = arith.constant 0 : i32
    %c0_i32_0 = arith.constant 0 : i32
    return %arg0, %c0_i32 : i32, i32
  }
}

</mosaic_0001>

<bundles_post_ra>
// kernel: tpu_custom_call.1
= control target key start
LH: loop header
LB: loop body
LE: loop exit
PB: predicated region body
PF: predicated region fallthrough
CT: control target
= control target key end

     0   :  { %9 = vsyncpa [#allocation3], 0  ;;  %s636_s0 = inlined_call_operand.hbm [shape: f32[8,16], index: 0, kind: input, shape index: {}]   ;;  %s637_s1 = inlined_call_operand.hbm [shape: f32[16,128], index: 1, kind: input, shape index: {}]   ;;  %s638_s2 = inlined_call_operand.hbm [shape: f32[2,128,128], index: 2, kind: input, shape index: {}]   ;;  %s639_s3 = inlined_call_operand.vmem [shape: f32[3,128], index: 3, kind: input, shape index: {}]   ;;  %s640_s4 = inlined_call_operand.hbm [shape: f32[8,128], index: 4, kind: output, shape index: {}]  }
   0x1   :  { %10 = vsyncpa [#allocation6], 0 }
   0x2   :  { %11 = vsyncpa [#allocation4], 0  ;;  %s548_s15 = smov [#allocation5]  }
   0x3   :  { %s27_s16 = sshll.u32 %s548_s15, 4  ;;  %s28_s16 = int_to_ptr.vmem [resolvable:$true] %s27_s16 }
   0x4   :  { %s470_s17 = scalar_lea.vmem %s28_s16, 256  ;;  %p475_p1 = scmp.lt.s32.totalorder %s28_s16, %s28_s16 }
   0x5   :  { %p471_p0 = scmp.ne.s32.totalorder %s28_s16, %s470_s17  ;;  %p476_p2 = scmp.lt.s32.totalorder %s470_s17, %s470_s17 }
   0x7   :  { %p477_p3 = por %p476_p2, %p475_p1 }
   0x9   :  { %p478_p4 = pnand %p477_p3, %p471_p0 }
   0xb   :  { %481 = shalt.err (!%p478_p4)
}
   0xc   :  { %s549_s18 = smov 128   ;;  %s550_s19 = smov 8  }
   0xd   :  { %33 = dma.hbm_to_vmem [thread:$0]  %s637_s1, 256, %s28_s16, [#allocation6], %s549_s18, %s549_s18, %s550_s19  }
   0xe   :  { %s551_s22 = smov [#allocation2]   ;;  %s552_s24 = smov [#allocation7]  }
   0xf   :  { %s18_s23 = sshll.u32 %s551_s22, 4  ;;  %s39_s25 = sshll.u32 %s552_s24, 4  ;;  %s19_s23 = int_to_ptr.vmem [resolvable:$true] %s18_s23  ;;  %s40_s25 = int_to_ptr.vmem [resolvable:$true] %s39_s25 }
  0x10   :  { %s490_s26 = scalar_lea.vmem %s19_s23, 128  ;;  %p495_p6 = scmp.lt.s32.totalorder %s19_s23, %s19_s23 }
  0x11   :  { %p491_p5 = scmp.ne.s32.totalorder %s19_s23, %s490_s26  ;;  %p496_p7 = scmp.lt.s32.totalorder %s490_s26, %s490_s26 }
  0x13   :  { %p497_p8 = por %p496_p7, %p495_p6 }
  0x15   :  { %p498_p9 = pnand %p497_p8, %p491_p5 }
  0x17   :  { %501 = shalt.err (!%p498_p9)
}
  0x18   :  { %21 = dma.hbm_to_vmem [thread:$0]  %s636_s0, 128, %s19_s23, [#allocation3]  }
  0x19   :  { %s510_s29 = scalar_lea.vmem %s40_s25, 4096  ;;  %p515_p11 = scmp.lt.s32.totalorder %s40_s25, %s40_s25 }
  0x1a   :  { %p511_p10 = scmp.ne.s32.totalorder %s40_s25, %s510_s29  ;;  %p516_p12 = scmp.lt.s32.totalorder %s510_s29, %s510_s29 }
  0x1c   :  { %p517_p13 = por %p516_p12, %p515_p11 }
  0x1e   :  { %p518_p0 = pnand %p517_p13, %p511_p10 }
  0x20   :  { %521 = shalt.err (!%p518_p0)
}
  0x21   :  { %45 = dma.hbm_to_vmem [thread:$0]  %s638_s2, 4096, %s40_s25, [#allocation6], %s549_s18, %s549_s18, %s550_s19  }
  0x22   :  { %542 = dma.done.wait [#allocation3], 128  }
  0x23   :  { %543 = vsyncadd [#allocation3], 4294967168 }
  0x24   :  { %544 = dma.done.wait [#allocation6], 4352  }
  0x25   :  { %545 = vsyncadd [#allocation6], 4294962944  ;;  %v553_v0 = vmov 0.0   ;;  %vm554_vm0 = vmmov 0   ;;  %v60_v1 = vld [vmem:[#allocation5 + $0x8] sm:$0xff]  ;;  %v59_v2 = vld [vmem:[#allocation5] sm:$0xff]  ;;  %v61_v33 = vlaneseq }
  0x26   :  { %377 = vmatprep.subr.mxu0 %v553_v0  ;;  %381 = vmatprep.mubr.msk.f32.mxu0 %vm554_vm0, %v553_v0  ;;  %v57_v3 = vld [vmem:[#allocation2] sm:$0xff]  ;;  %vm65_vm1 = vcmask 130048   ;;  %v155_v4 = vld [vmem:[#allocation7 + $0x78] sm:$0xff]  ;;  %v154_v5 = vld [vmem:[#allocation7 + $0x70] sm:$0xff] }
  0x27   :  { %384 = vmatprep.subr.mxu1 %v553_v0  ;;  %416 = vmatprep.mubr.msk.f32.mxu1 %vm554_vm0, %v553_v0  ;;  %v153_v6 = vld [vmem:[#allocation7 + $0x68] sm:$0xff]  ;;  %v152_v7 = vld [vmem:[#allocation7 + $0x60] sm:$0xff]  ;;  %v151_v8 = vld [vmem:[#allocation7 + $0x58] sm:$0xff]  ;;  %v62_v34 = vshrl.u32 %v61_v33, 7 }
  0x28   :  { %378 = vmatpush3.msra.mxu0 %v60_v1  ;;  %385 = vmatpush3.msra.mxu1 %v155_v4  ;;  %v150_v9 = vld [vmem:[#allocation7 + $0x50] sm:$0xff]  ;;  %v149_v10 = vld [vmem:[#allocation7 + $0x48] sm:$0xff]  ;;  %v148_v11 = vld [vmem:[#allocation7 + $0x40] sm:$0xff] }
  0x29   :  { %379 = vmatprep.subr.mxu0 %v553_v0  ;;  %386 = vmatprep.subr.mxu1 %v553_v0  ;;  %v147_v12 = vld [vmem:[#allocation7 + $0x38] sm:$0xff]  ;;  %v146_v13 = vld [vmem:[#allocation7 + $0x30] sm:$0xff]  ;;  %v145_v14 = vld [vmem:[#allocation7 + $0x28] sm:$0xff]  ;;  %v63_v35 = vsub.s32 0, %v62_v34  ;;  %v158_v45 = vsub.s32 1, %v62_v34  ;;  %v250_v51 = vsub.s32 2, %v62_v34 }
  0x2a   :  { %380 = vmatpush3.msra.mxu0 %v59_v2  ;;  %387 = vmatpush3.msra.mxu1 %v154_v5  ;;  %v144_v15 = vld [vmem:[#allocation7 + $0x20] sm:$0xff]  ;;  %v143_v16 = vld [vmem:[#allocation7 + $0x18] sm:$0xff]  ;;  %v142_v17 = vld [vmem:[#allocation7 + $0x10] sm:$0xff] }
  0x2b   :  { %382 = vmatmul.mubr.msk.f32.vlgmr.msra.gmra.mxu0 %vm65_vm1, %v57_v3  ;;  %388 = vmatprep.subr.mxu1 %v553_v0  ;;  %v141_v18 = vld [vmem:[#allocation7 + $0x8] sm:$0xff]  ;;  %v140_v19 = vld [vmem:[#allocation7] sm:$0xff]  ;;  %v247_v20 = vld [vmem:[#allocation7 + $0xf8] sm:$0xff] }
  0x2c   :  { %419 = vmatprep.subr.mxu0 %v553_v0  ;;  %389 = vmatpush3.msra.mxu1 %v153_v6  ;;  %v246_v21 = vld [vmem:[#allocation7 + $0xf0] sm:$0xff]  ;;  %v245_v22 = vld [vmem:[#allocation7 + $0xe8] sm:$0xff]  ;;  %v244_v23 = vld [vmem:[#allocation7 + $0xe0] sm:$0xff] }
  0x2d   :  { %451 = vmatprep.mubr.msk.f32.mxu0 %vm554_vm0, %v553_v0  ;;  %390 = vmatprep.subr.mxu1 %v553_v0  ;;  %v243_v24 = vld [vmem:[#allocation7 + $0xd8] sm:$0xff]  ;;  %v242_v25 = vld [vmem:[#allocation7 + $0xd0] sm:$0xff]  ;;  %v241_v26 = vld [vmem:[#allocation7 + $0xc8] sm:$0xff] }
  0x2e   :  { %391 = vmatpush3.msra.mxu1 %v152_v7  ;;  %420 = vmatpush3.msra.mxu0 %v247_v20  ;;  %v240_v27 = vld [vmem:[#allocation7 + $0xc0] sm:$0xff]  ;;  %v239_v28 = vld [vmem:[#allocation7 + $0xb8] sm:$0xff]  ;;  %v238_v29 = vld [vmem:[#allocation7 + $0xb0] sm:$0xff] }
  0x2f   :  { %392 = vmatprep.subr.mxu1 %v553_v0  ;;  %421 = vmatprep.subr.mxu0 %v553_v0  ;;  %v237_v30 = vld [vmem:[#allocation7 + $0xa8] sm:$0xff]  ;;  %v236_v31 = vld [vmem:[#allocation7 + $0xa0] sm:$0xff]  ;;  %v235_v32 = vld [vmem:[#allocation7 + $0x98] sm:$0xff] }
  0x30   :  { %393 = vmatpush3.msra.mxu1 %v151_v8  ;;  %422 = vmatpush3.msra.mxu0 %v246_v21  ;;  %v58_v36 = vld [vmem:[%s639_s3] sm:$0x7]  ;;  %v234_v42 = vld [vmem:[#allocation7 + $0x90] sm:$0xff]  ;;  %v232_v44 = vld [vmem:[#allocation7 + $0x80] sm:$0xff]  ;;  %s555_s3 = smov [#allocation8]  }
  0x31   :  { %394 = vmatprep.subr.mxu1 %v553_v0  ;;  %423 = vmatprep.subr.mxu0 %v553_v0  ;;  %v64_v37 = vrot.slane %v58_v36, %v63_v35  ;;  %v233_v43 = vld [vmem:[#allocation7 + $0x88] sm:$0xff]  ;;  %v159_v46 = vrot.slane %v58_v36, %v158_v45  ;;  %v251_v52 = vrot.slane %v58_v36, %v250_v51  ;;  %s329_s5 = sshll.u32 %s555_s3, 4  ;;  %s330_s5 = int_to_ptr.vmem [resolvable:$true] %s329_s5 }
  0x32   :  { %395 = vmatpush3.msra.mxu1 %v150_v9  ;;  %424 = vmatpush3.msra.mxu0 %v245_v22  ;;  %s522_s6 = scalar_lea.vmem %s330_s5, 128  ;;  %p527_p2 = scmp.lt.s32.totalorder %s330_s5, %s330_s5 }
  0x33   :  { %396 = vmatprep.subr.mxu1 %v553_v0  ;;  %425 = vmatprep.subr.mxu0 %v553_v0  ;;  %p523_p1 = scmp.ne.s32.totalorder %s330_s5, %s522_s6  ;;  %p528_p3 = scmp.lt.s32.totalorder %s522_s6, %s522_s6 }
  0x34   :  { %397 = vmatpush3.msra.mxu1 %v149_v10  ;;  %426 = vmatpush3.msra.mxu0 %v244_v23 }
  0x35   :  { %398 = vmatprep.subr.mxu1 %v553_v0  ;;  %427 = vmatprep.subr.mxu0 %v553_v0  ;;  %p529_p4 = por %p528_p3, %p527_p2 }
  0x36   :  { %399 = vmatpush3.msra.mxu1 %v148_v11  ;;  %428 = vmatpush3.msra.mxu0 %v243_v24 }
  0x37   :  { %400 = vmatprep.subr.mxu1 %v553_v0  ;;  %429 = vmatprep.subr.mxu0 %v553_v0  ;;  %p530_p5 = pnand %p529_p4, %p523_p1 }
  0x38   :  { %401 = vmatpush3.msra.mxu1 %v147_v12  ;;  %430 = vmatpush3.msra.mxu0 %v242_v25 }
  0x39   :  { %402 = vmatprep.subr.mxu1 %v553_v0  ;;  %431 = vmatprep.subr.mxu0 %v553_v0 }
  0x3a   :  { %403 = vmatpush3.msra.mxu1 %v146_v13  ;;  %432 = vmatpush3.msra.mxu0 %v241_v26 }
  0x3b   :  { %404 = vmatprep.subr.mxu1 %v553_v0  ;;  %433 = vmatprep.subr.mxu0 %v553_v0 }
  0x3c   :  { %405 = vmatpush3.msra.mxu1 %v145_v14  ;;  %434 = vmatpush3.msra.mxu0 %v240_v27 }
  0x3d   :  { %406 = vmatprep.subr.mxu1 %v553_v0  ;;  %435 = vmatprep.subr.mxu0 %v553_v0 }
  0x3e   :  { %407 = vmatpush3.msra.mxu1 %v144_v15  ;;  %436 = vmatpush3.msra.mxu0 %v239_v28 }
  0x3f   :  { %408 = vmatprep.subr.mxu1 %v553_v0  ;;  %437 = vmatprep.subr.mxu0 %v553_v0 }
  0x40   :  { %409 = vmatpush3.msra.mxu1 %v143_v16  ;;  %438 = vmatpush3.msra.mxu0 %v238_v29 }
  0x41   :  { %410 = vmatprep.subr.mxu1 %v553_v0  ;;  %439 = vmatprep.subr.mxu0 %v553_v0 }
  0x42   :  { %411 = vmatpush3.msra.mxu1 %v142_v17  ;;  %440 = vmatpush3.msra.mxu0 %v237_v30 }
  0x43   :  { %412 = vmatprep.subr.mxu1 %v553_v0  ;;  %441 = vmatprep.subr.mxu0 %v553_v0 }
  0x44   :  { %413 = vmatpush3.msra.mxu1 %v141_v18  ;;  %442 = vmatpush3.msra.mxu0 %v236_v31 }
  0x45   :  { %414 = vmatprep.subr.mxu1 %v553_v0  ;;  %443 = vmatprep.subr.mxu0 %v553_v0 }
  0x46   :  { %415 = vmatpush3.msra.mxu1 %v140_v19  ;;  %444 = vmatpush3.msra.mxu0 %v235_v32 }
  0x47   :  { %445 = vmatprep.subr.mxu0 %v553_v0 }
  0x48   :  { %446 = vmatpush3.msra.mxu0 %v234_v42 }
  0x49   :  { %447 = vmatprep.subr.mxu0 %v553_v0 }
  0x4a   :  { %448 = vmatpush3.msra.mxu0 %v233_v43 }
  0x4b   :  { %449 = vmatprep.subr.mxu0 %v553_v0 }
  0x4c   :  { %450 = vmatpush3.msra.mxu0 %v232_v44 }
  0xeb   :  { %v135_v38 = vpop.f32.mrf.mxu0 }
  0xec   :  { %v136_v39 = vadd.f32 %v135_v38, %v64_v37 }
  0xed   :  { %v383_v40 = vpop.f32.mrf.mxu0 }
  0xee   :  { %v139_v41 = vmax.f32 %v136_v39, 0.0 }
  0xf0   :  { %417 = vmatmul.mubr.f32.vlgmr.msra.gmra.mxu1 %v139_v41 }
 0x1b0   :  { %v226_v47 = vpop.f32.mrf.mxu1 }
 0x1b1   :  { %v227_v48 = vadd.f32 %v226_v47, %v159_v46 }
 0x1b2   :  { %v418_v49 = vpop.f32.mrf.mxu1 }
 0x1b3   :  { %v230_v50 = vmax.f32 %v227_v48, 0.0 }
 0x1b5   :  { %452 = vmatmul.mubr.f32.vlgmr.msra.gmra.mxu0 %v230_v50 }
 0x275   :  { %v318_v53 = vpop.f32.mrf.mxu0 }
 0x276   :  { %v319_v54 = vadd.f32 %v318_v53, %v251_v52 }
 0x277   :  { %v453_v55 = vpop.f32.mrf.mxu0 }
 0x278   :  { %322 = vst [vmem:[#allocation8] sm:$0xff] %v319_v54 }
 0x279   :  { %533 = shalt.err (!%p530_p5)
}
 0x27a   :  { %332 = dma.vmem_to_hbm [thread:$0]  %s330_s5, 128, %s640_s4, [#allocation4]  }
 0x27b   :  { %546 = dma.done.wait [#allocation4], 128  }
 0x27c   :  { %547 = vsyncadd [#allocation4], 4294967168 }
 0x27d   :  { %336 = vsyncpa [#allocation3], 1 }
 0x27e   :  { %337 = vsyncpa [#allocation6], 1 }
 0x27f   :  { %338 = vsyncpa [#allocation4], 1 }

</bundles_post_ra>
